<compile_context>
chip_gen: v7x
topology: tpu7x:2x2x1
jax: 0.10.0
libtpu: 0.0.40
codegen_flags: <defaults>
</compile_context>

<pallas_src>
import jax
import jax.numpy as jnp
from jax.experimental import pallas as pl
from jax.experimental.pallas import tpu as pltpu

LATENT = 32
HIDDEN = 128
OUT = 256


def _round_up(x, m):
    return ((x + m - 1) // m) * m


def _pad_rows(a, rows):
    if a.shape[0] == rows:
        return a
    pad = jnp.zeros((rows - a.shape[0],) + a.shape[1:], a.dtype)
    return jnp.concatenate([a, pad], axis=0)


def _internally_perturbable_kernel(z_ref, p0_ref, p1_ref, p2_ref, p3_ref,
                                   prm_ref, w0_ref, w1_ref, out_ref):
    # Packed parameter slab: rows = [s0, s1, s2, s3, b0, b1] (lane-padded to 256).
    prm = prm_ref[...]
    s0 = prm[0:1, :LATENT]
    s1 = prm[1:2, :HIDDEN]
    s2 = prm[2:3, :]
    s3 = prm[3:4, :]
    b0 = prm[4:5, :HIDDEN]
    b1 = prm[5:6, :]

    # i == 0: perturb the latent (f32 elementwise path).
    x = z_ref[...] + s0 * p0_ref[...]
    # chunk0: Linear(LATENT -> HIDDEN) on the MXU (bf16 operands, f32 accum).
    h = jnp.dot(x.astype(jnp.bfloat16), w0_ref[...],
                preferred_element_type=jnp.float32) + b0
    h = h + s1 * p1_ref[...]
    # chunk1: ReLU, Linear(HIDDEN -> OUT).
    h = jnp.maximum(h, 0.0)
    o = jnp.dot(h.astype(jnp.bfloat16), w1_ref[...],
                preferred_element_type=jnp.float32) + b1
    o = o + s2 * p2_ref[...]
    # chunk2: Tanh.
    o = jnp.tanh(o) + s3 * p3_ref[...]
    out_ref[...] = o


def pack_params(scales, b0, b1):
    """One lane-dense f32 slab for all tiny operands -> a single resident DMA.
    Call ONCE when scales / biases are fixed (hoisted out of the per-call path)."""
    prm = jnp.zeros((8, OUT), jnp.float32)
    prm = prm.at[0, :LATENT].set(scales[0].reshape(-1))
    prm = prm.at[1, :HIDDEN].set(scales[1].reshape(-1))
    prm = prm.at[2, :].set(scales[2].reshape(-1))
    prm = prm.at[3, :].set(scales[3].reshape(-1))
    prm = prm.at[4, :HIDDEN].set(b0.reshape(-1))
    prm = prm.at[5, :].set(b1.reshape(-1))
    return prm


def internally_perturbable_forward(z, ps, prm, w0_bf, w1_bf, *, block_b=512):
    """Fused forward.

    z:  (B, LATENT) f32        ps: list of 4 f32 arrays (B, LATENT/HIDDEN/OUT/OUT)
    prm: (8, OUT) f32 packed slab from pack_params (precomputed)
    w0_bf: (LATENT, HIDDEN) bf16, w1_bf: (HIDDEN, OUT) bf16 (precomputed casts)

    Batch is tiled over a 'parallel' grid axis; the tile is capped at cdiv(B, 2)
    so there are >=2 tiles whenever B > 8 (v7x megacore sharding).  Rows are
    padded only when B is not a multiple of the tile.  Weights / packed params
    stay VMEM-resident across tiles (same block index every step).
    """
    B = z.shape[0]
    bm = _round_up(max(8, min(block_b, pl.cdiv(B, 2))), 8)
    B_pad = _round_up(B, bm)
    n_tiles = B_pad // bm

    p0, p1, p2, p3 = ps
    if B_pad != B:
        z, p0, p1, p2, p3 = (_pad_rows(a, B_pad) for a in (z, p0, p1, p2, p3))

    def batch_spec(lanes):
        return pl.BlockSpec((bm, lanes), lambda i: (i, 0))

    def resident(shape):
        return pl.BlockSpec(shape, lambda i: (0, 0))

    out = pl.pallas_call(
        _internally_perturbable_kernel,
        out_shape=jax.ShapeDtypeStruct((B_pad, OUT), jnp.float32),
        grid=(n_tiles,),
        in_specs=[
            batch_spec(LATENT),            # z
            batch_spec(LATENT),            # ps0
            batch_spec(HIDDEN),            # ps1
            batch_spec(OUT),               # ps2
            batch_spec(OUT),               # ps3
            resident((8, OUT)),            # packed scales + biases (resident)
            resident((LATENT, HIDDEN)),    # W0^T bf16 (resident)
            resident((HIDDEN, OUT)),       # W1^T bf16 (resident)
        ],
        out_specs=pl.BlockSpec((bm, OUT), lambda i: (i, 0)),
        compiler_params=pltpu.CompilerParams(
            dimension_semantics=("parallel",)),
    )(z, p0, p1, p2, p3, prm, w0_bf, w1_bf)
    return out if B_pad == B else out[:B]


def chunks_reference(z, w0_t, b0, w1_t, b1):
    """Pure-JAX equivalent of running the chunked splittable generator (f32)."""
    acts = [z]
    a0 = z @ w0_t + b0                         # chunk0: Linear
    acts.append(a0)
    a1 = jnp.maximum(a0, 0.0) @ w1_t + b1      # chunk1: ReLU, Linear
    acts.append(a1)
    a2 = jnp.tanh(a1)                          # chunk2: Tanh
    acts.append(a2)
    return acts


def reference_forward(z, ps, scales, w0_t, b0, w1_t, b1):
    """Reference matching the kernel's math (bf16 matmul operands, f32 accum)."""
    x = z + scales[0] * ps[0]
    h = jnp.dot(x.astype(jnp.bfloat16), w0_t.astype(jnp.bfloat16),
                preferred_element_type=jnp.float32) + b0
    h = h + scales[1] * ps[1]
    o = jnp.dot(jnp.maximum(h, 0.0).astype(jnp.bfloat16), w1_t.astype(jnp.bfloat16),
                preferred_element_type=jnp.float32) + b1
    o = o + scales[2] * ps[2]
    return jnp.tanh(o) + scales[3] * ps[3]


if __name__ == "__main__":
    key = jax.random.PRNGKey(0)
    k = jax.random.split(key, 12)

    # Deterministic synthetic parameters (module __init__ shapes, not a checkpoint).
    w0 = jax.random.normal(k[0], (HIDDEN, LATENT), jnp.float32) / jnp.sqrt(LATENT)
    b0 = jax.random.normal(k[1], (1, HIDDEN), jnp.float32) * 0.01
    w1 = jax.random.normal(k[2], (OUT, HIDDEN), jnp.float32) / jnp.sqrt(HIDDEN)
    b1 = jax.random.normal(k[3], (1, OUT), jnp.float32) * 0.01
    w0_t, w1_t = w0.T, w1.T   # (in, out) layout so the kernel computes x @ W + b

    # get_neuron_ranges equivalent: min/max over a calibration batch of activations.
    z_cal = jax.random.normal(k[4], (16, LATENT), jnp.float32)
    acts = chunks_reference(z_cal, w0_t, b0, w1_t, b1)
    n_mins = [jnp.min(a, axis=0) for a in acts]
    n_maxs = [jnp.max(a, axis=0) for a in acts]

    # which_neurons falsy -> which = ones; pert_weights are scalars per layer.
    pert_w = [0.1, 0.2, 0.3, 0.4]          # len(splittable) + 1 entries
    scales = [((n_maxs[i] - n_mins[i]) * pert_w[i]).reshape(1, -1) for i in range(4)]

    # Hoisted, precomputed-once operands (per review: amortize per-call overhead).
    prm = pack_params(scales, b0, b1)
    w0_bf = w0_t.astype(jnp.bfloat16)   # (LATENT, HIDDEN)
    w1_bf = w1_t.astype(jnp.bfloat16)   # (HIDDEN, OUT)

    def run_case(batch, block_b):
        kk = jax.random.split(jax.random.PRNGKey(batch), 8)
        z = jax.random.normal(kk[0], (batch, LATENT), jnp.float32)
        ps_shapes = [(batch, LATENT), (batch, HIDDEN), (batch, OUT), (batch, OUT)]
        ps = [jax.random.normal(kk[1 + i], s, jnp.float32) * 0.05
              for i, s in enumerate(ps_shapes)]
        out = internally_perturbable_forward(z, ps, prm, w0_bf, w1_bf,
                                             block_b=block_b)
        out = jax.block_until_ready(out)
        ref = reference_forward(z, ps, scales, w0_t, b0, w1_t, b1)
        assert out.shape == (batch, OUT) and out.dtype == jnp.float32
        assert jnp.allclose(out, ref, atol=1e-4, rtol=1e-4)
        # Sanity vs. full-f32 reference (loose: bf16-operand matmul rounding).
        x = z + scales[0] * ps[0]
        h = x @ w0_t + b0 + scales[1] * ps[1]
        o = jnp.maximum(h, 0.0) @ w1_t + b1 + scales[2] * ps[2]
        ref_f32 = jnp.tanh(o) + scales[3] * ps[3]
        assert jnp.allclose(out, ref_f32, atol=1e-1)

    # Small module-consistent batch (padded to 8 sublanes inside the wrapper).
    run_case(batch=2, block_b=512)
    # Multi-tile 'parallel' grid with a non-dividing batch (padding path).
    run_case(batch=20, block_b=8)
    # Larger batch: 2 x 512-row tiles, no padding, weights resident across tiles.
    run_case(batch=1024, block_b=512)

    # TODO(synk): BigGAN branch (torch.load('stds.pt'), np.load(z_path), external
    # pretrained GAN blocks) has no self-contained equivalent and is not implemented.
    print("KERNEL_OK")
</pallas_src>

<mosaic_0001>
module attributes {stable_mosaic.version = 11 : i64} {
  func.func @_internally_perturbable_kernel(%arg0: i32, %arg1: memref<8x32xf32, #tpu.memory_space<vmem>>, %arg2: memref<8x32xf32, #tpu.memory_space<vmem>>, %arg3: memref<8x128xf32, #tpu.memory_space<vmem>>, %arg4: memref<8x256xf32, #tpu.memory_space<vmem>>, %arg5: memref<8x256xf32, #tpu.memory_space<vmem>>, %arg6: memref<8x256xf32, #tpu.memory_space<vmem>>, %arg7: memref<32x128xbf16, #tpu.memory_space<vmem>>, %arg8: memref<128x256xbf16, #tpu.memory_space<vmem>>, %arg9: memref<8x256xf32, #tpu.memory_space<vmem>>) attributes {dimension_semantics = [#tpu.dimension_semantics<parallel>], iteration_bounds = array<i64: 1>, scalar_prefetch = 0 : i64, scratch_operands = 0 : i64, tpu.core_type = #tpu.core_type<tc>, window_params = [{transform_indices = @transform_0, window_bounds = array<i64: 8, 32>}, {transform_indices = @transform_1, window_bounds = array<i64: 8, 32>}, {transform_indices = @transform_2, window_bounds = array<i64: 8, 128>}, {transform_indices = @transform_3, window_bounds = array<i64: 8, 256>}, {transform_indices = @transform_4, window_bounds = array<i64: 8, 256>}, {pipeline_mode = #tpu.pipeline_mode<synchronous>, transform_indices = @transform_5, window_bounds = array<i64: 8, 256>}, {pipeline_mode = #tpu.pipeline_mode<synchronous>, transform_indices = @transform_6, window_bounds = array<i64: 32, 128>}, {pipeline_mode = #tpu.pipeline_mode<synchronous>, transform_indices = @transform_7, window_bounds = array<i64: 128, 256>}, {transform_indices = @transform_8, window_bounds = array<i64: 8, 256>}]} {
    %c0 = arith.constant 0 : index
    %c0_0 = arith.constant 0 : index
    %0 = vector.load %arg6[%c0, %c0_0] : memref<8x256xf32, #tpu.memory_space<vmem>>, vector<8x256xf32>
    %1 = vector.extract_strided_slice %0 {offsets = [0, 0], sizes = [1, 32], strides = [1, 1]} : vector<8x256xf32> to vector<1x32xf32>
    %2 = vector.extract_strided_slice %0 {offsets = [1, 0], sizes = [1, 128], strides = [1, 1]} : vector<8x256xf32> to vector<1x128xf32>
    %3 = vector.extract_strided_slice %0 {offsets = [2, 0], sizes = [1, 256], strides = [1, 1]} : vector<8x256xf32> to vector<1x256xf32>
    %4 = vector.extract_strided_slice %0 {offsets = [3, 0], sizes = [1, 256], strides = [1, 1]} : vector<8x256xf32> to vector<1x256xf32>
    %5 = vector.extract_strided_slice %0 {offsets = [4, 0], sizes = [1, 128], strides = [1, 1]} : vector<8x256xf32> to vector<1x128xf32>
    %6 = vector.extract_strided_slice %0 {offsets = [5, 0], sizes = [1, 256], strides = [1, 1]} : vector<8x256xf32> to vector<1x256xf32>
    %c0_1 = arith.constant 0 : index
    %c0_2 = arith.constant 0 : index
    %7 = vector.load %arg1[%c0_1, %c0_2] : memref<8x32xf32, #tpu.memory_space<vmem>>, vector<8x32xf32>
    %c0_3 = arith.constant 0 : index
    %c0_4 = arith.constant 0 : index
    %8 = vector.load %arg2[%c0_3, %c0_4] : memref<8x32xf32, #tpu.memory_space<vmem>>, vector<8x32xf32>
    %9 = vector.broadcast %1 : vector<1x32xf32> to vector<8x32xf32>
    %10 = arith.mulf %9, %8 : vector<8x32xf32>
    %11 = arith.addf %7, %10 : vector<8x32xf32>
    %12 = arith.truncf %11 : vector<8x32xf32> to vector<8x32xbf16>
    %c0_5 = arith.constant 0 : index
    %c0_6 = arith.constant 0 : index
    %13 = vector.load %arg7[%c0_5, %c0_6] : memref<32x128xbf16, #tpu.memory_space<vmem>>, vector<32x128xbf16>
    %cst = arith.constant dense<0.000000e+00> : vector<8x128xf32>
    %14 = tpu.matmul %12, %13, %cst {dimension_numbers = #tpu.dot_dimension_numbers<[1], [0], [0], [1], [0, 0, 1, 1], [], []>} : vector<8x32xbf16>, vector<32x128xbf16>, vector<8x128xf32> -> vector<8x128xf32>
    %15 = vector.broadcast %5 : vector<1x128xf32> to vector<8x128xf32>
    %16 = arith.addf %14, %15 : vector<8x128xf32>
    %c0_7 = arith.constant 0 : index
    %c0_8 = arith.constant 0 : index
    %17 = vector.load %arg3[%c0_7, %c0_8] : memref<8x128xf32, #tpu.memory_space<vmem>>, vector<8x128xf32>
    %18 = vector.broadcast %2 : vector<1x128xf32> to vector<8x128xf32>
    %19 = arith.mulf %18, %17 : vector<8x128xf32>
    %20 = arith.addf %16, %19 : vector<8x128xf32>
    %cst_9 = arith.constant 0.000000e+00 : f32
    %21 = vector.broadcast %cst_9 : f32 to vector<8x128xf32>
    %22 = arith.maximumf %20, %21 : vector<8x128xf32>
    %23 = arith.truncf %22 : vector<8x128xf32> to vector<8x128xbf16>
    %c0_10 = arith.constant 0 : index
    %c0_11 = arith.constant 0 : index
    %24 = vector.load %arg8[%c0_10, %c0_11] : memref<128x256xbf16, #tpu.memory_space<vmem>>, vector<128x256xbf16>
    %cst_12 = arith.constant dense<0.000000e+00> : vector<8x256xf32>
    %25 = tpu.matmul %23, %24, %cst_12 {dimension_numbers = #tpu.dot_dimension_numbers<[1], [0], [0], [1], [0, 0, 1, 1], [], []>} : vector<8x128xbf16>, vector<128x256xbf16>, vector<8x256xf32> -> vector<8x256xf32>
    %26 = vector.broadcast %6 : vector<1x256xf32> to vector<8x256xf32>
    %27 = arith.addf %25, %26 : vector<8x256xf32>
    %c0_13 = arith.constant 0 : index
    %c0_14 = arith.constant 0 : index
    %28 = vector.load %arg4[%c0_13, %c0_14] : memref<8x256xf32, #tpu.memory_space<vmem>>, vector<8x256xf32>
    %29 = vector.broadcast %3 : vector<1x256xf32> to vector<8x256xf32>
    %30 = arith.mulf %29, %28 : vector<8x256xf32>
    %31 = arith.addf %27, %30 : vector<8x256xf32>
    %32 = math.tanh %31 : vector<8x256xf32>
    %c0_15 = arith.constant 0 : index
    %c0_16 = arith.constant 0 : index
    %33 = vector.load %arg5[%c0_15, %c0_16] : memref<8x256xf32, #tpu.memory_space<vmem>>, vector<8x256xf32>
    %34 = vector.broadcast %4 : vector<1x256xf32> to vector<8x256xf32>
    %35 = arith.mulf %34, %33 : vector<8x256xf32>
    %36 = arith.addf %32, %35 : vector<8x256xf32>
    %c0_17 = arith.constant 0 : index
    %c0_18 = arith.constant 0 : index
    %37 = vector.load %arg9[%c0_17, %c0_18] : memref<8x256xf32, #tpu.memory_space<vmem>>, vector<8x256xf32>
    tpu.vector_store %arg9[%c0_17, %c0_18], %36 {strides = array<i32>} : memref<8x256xf32, #tpu.memory_space<vmem>>, vector<8x256xf32>,
    return
  }
  func.func @transform_0(%arg0: i32) -> (i32, i32) {
    %c0_i32 = arith.constant 0 : i32
    %c0_i32_0 = arith.constant 0 : i32
    return %arg0, %c0_i32 : i32, i32
  }
  func.func @transform_1(%arg0: i32) -> (i32, i32) {
    %c0_i32 = arith.constant 0 : i32
    %c0_i32_0 = arith.constant 0 : i32
    return %arg0, %c0_i32 : i32, i32
  }
  func.func @transform_2(%arg0: i32) -> (i32, i32) {
    %c0_i32 = arith.constant 0 : i32
    %c0_i32_0 = arith.constant 0 : i32
    return %arg0, %c0_i32 : i32, i32
  }
  func.func @transform_3(%arg0: i32) -> (i32, i32) {
    %c0_i32 = arith.constant 0 : i32
    %c0_i32_0 = arith.constant 0 : i32
    return %arg0, %c0_i32 : i32, i32
  }
  func.func @transform_4(%arg0: i32) -> (i32, i32) {
    %c0_i32 = arith.constant 0 : i32
    %c0_i32_0 = arith.constant 0 : i32
    return %arg0, %c0_i32 : i32, i32
  }
  func.func @transform_5(%arg0: i32) -> (i32, i32) {
    %c0_i32 = arith.constant 0 : i32
    %c0_i32_0 = arith.constant 0 : i32
    %c0_i32_1 = arith.constant 0 : i32
    return %c0_i32, %c0_i32_0 : i32, i32
  }
  func.func @transform_6(%arg0: i32) -> (i32, i32) {
    %c0_i32 = arith.constant 0 : i32
    %c0_i32_0 = arith.constant 0 : i32
    %c0_i32_1 = arith.constant 0 : i32
    return %c0_i32, %c0_i32_0 : i32, i32
  }
  func.func @transform_7(%arg0: i32) -> (i32, i32) {
    %c0_i32 = arith.constant 0 : i32
    %c0_i32_0 = arith.constant 0 : i32
    %c0_i32_1 = arith.constant 0 : i32
    return %c0_i32, %c0_i32_0 : i32, i32
  }
  func.func @transform_8(%arg0: i32) -> (i32, i32) {
    %c0_i32 = arith.constant 0 : i32
    %c0_i32_0 = arith.constant 0 : i32
    return %arg0, %c0_i32 : i32, i32
  }
}

</mosaic_0001>

<bundles_post_ra>
// kernel: tpu_custom_call.1
= control target key start
LH: loop header
LB: loop body
LE: loop exit
PB: predicated region body
PF: predicated region fallthrough
CT: control target
= control target key end

     0   :  { %13 = vsyncpa [#allocation3], 0  ;;  %s834_s0 = inlined_call_operand.hbm [shape: f32[8,32], index: 0, kind: input, shape index: {}]   ;;  %s835_s1 = inlined_call_operand.hbm [shape: f32[8,32], index: 1, kind: input, shape index: {}]   ;;  %s836_s2 = inlined_call_operand.hbm [shape: f32[8,128], index: 2, kind: input, shape index: {}]   ;;  %s837_s3 = inlined_call_operand.hbm [shape: f32[8,256], index: 3, kind: input, shape index: {}]   ;;  %s838_s4 = inlined_call_operand.hbm [shape: f32[8,256], index: 4, kind: input, shape index: {}]   ;;  %s839_s5 = inlined_call_operand.vmem [shape: f32[8,256], index: 5, kind: input, shape index: {}]   ;;  %s840_s6 = inlined_call_operand.hbm [shape: bf16[32,128], index: 6, kind: input, shape index: {}]   ;;  %s841_s7 = inlined_call_operand.hbm [shape: bf16[128,256], index: 7, kind: input, shape index: {}]   ;;  %s842_s8 = inlined_call_operand.hbm [shape: f32[8,256], index: 8, kind: output, shape index: {}]  }
   0x1   :  { %14 = vsyncpa [#allocation6], 0 }
   0x2   :  { %15 = vsyncpa [#allocation9], 0 }
   0x3   :  { %16 = vsyncpa [#allocation12], 0 }
   0x4   :  { %17 = vsyncpa [#allocation4], 0  ;;  %s656_s27 = smov [#allocation5]   ;;  %s657_s29 = smov [#allocation8]  }
   0x5   :  { %s34_s28 = sshll.u32 %s656_s27, 4  ;;  %s54_s30 = sshll.u32 %s657_s29, 4  ;;  %s35_s28 = int_to_ptr.vmem [resolvable:$true] %s34_s28  ;;  %s55_s30 = int_to_ptr.vmem [resolvable:$true] %s54_s30 }
   0x6   :  { %s470_s11 = scalar_lea.hbm %s835_s1, 128 }
   0x7   :  { %p471_p0 = scmp.ne.s32.totalorder %s835_s1, %s470_s11  ;;  %p474_p1 = scmp.lt.u32.totalorder %s470_s11, %s835_s1 }
   0x9   :  { %p476_p2 = pnand %p474_p1, %p471_p0 }
   0xb   :  { %479 = shalt.err (!%p476_p2)
}
   0xc   :  { %s480_s16 = scalar_lea.vmem %s35_s28, 128  ;;  %p485_p4 = scmp.lt.s32.totalorder %s35_s28, %s35_s28 }
   0xd   :  { %p481_p3 = scmp.ne.s32.totalorder %s35_s28, %s480_s16  ;;  %p486_p5 = scmp.lt.s32.totalorder %s480_s16, %s480_s16 }
   0xf   :  { %p487_p6 = por %p486_p5, %p485_p4 }
  0x11   :  { %p488_p7 = pnand %p487_p6, %p481_p3 }
  0x13   :  { %491 = shalt.err (!%p488_p7)
}
  0x14   :  { %37 = dma.hbm_to_vmem [thread:$0]  %s835_s1, 128, %s35_s28, [#allocation6]  }
  0x15   :  { %s492_s21 = scalar_lea.hbm %s837_s3, 256 }
  0x16   :  { %p493_p8 = scmp.ne.s32.totalorder %s837_s3, %s492_s21  ;;  %p496_p9 = scmp.lt.u32.totalorder %s492_s21, %s837_s3 }
  0x18   :  { %p498_p10 = pnand %p496_p9, %p493_p8 }
  0x1a   :  { %501 = shalt.err (!%p498_p10)
}
  0x1b   :  { %s502_s26 = scalar_lea.vmem %s55_s30, 256  ;;  %p507_p12 = scmp.lt.s32.totalorder %s55_s30, %s55_s30 }
  0x1c   :  { %p503_p11 = scmp.ne.s32.totalorder %s55_s30, %s502_s26  ;;  %p508_p13 = scmp.lt.s32.totalorder %s502_s26, %s502_s26 }
  0x1e   :  { %p509_p0 = por %p508_p13, %p507_p12 }
  0x20   :  { %p510_p1 = pnand %p509_p0, %p503_p11 }
  0x22   :  { %513 = shalt.err (!%p510_p1)
}
  0x23   :  { %57 = dma.hbm_to_vmem [thread:$0]  %s837_s3, 256, %s55_s30, [#allocation9]  }
  0x24   :  { %s658_s28 = smov [#allocation11]   ;;  %s514_s11 = scalar_lea.hbm %s840_s6, 256 }
  0x25   :  { %s75_s29 = sshll.u32 %s658_s28, 4  ;;  %p515_p2 = scmp.ne.s32.totalorder %s840_s6, %s514_s11  ;;  %s76_s29 = int_to_ptr.vmem [resolvable:$true] %s75_s29 }
  0x26   :  { %p518_p3 = scmp.lt.u32.totalorder %s514_s11, %s840_s6 }
  0x28   :  { %p520_p4 = pnand %p518_p3, %p515_p2 }
  0x2a   :  { %523 = shalt.err (!%p520_p4)
}
  0x2b   :  { %s524_s16 = scalar_lea.vmem %s76_s29, 256  ;;  %p529_p6 = scmp.lt.s32.totalorder %s76_s29, %s76_s29 }
  0x2c   :  { %p525_p5 = scmp.ne.s32.totalorder %s76_s29, %s524_s16  ;;  %p530_p7 = scmp.lt.s32.totalorder %s524_s16, %s524_s16 }
  0x2e   :  { %p531_p8 = por %p530_p7, %p529_p6 }
  0x30   :  { %p532_p9 = pnand %p531_p8, %p525_p5 }
  0x32   :  { %535 = shalt.err (!%p532_p9)
}
  0x33   :  { %s659_s3 = smov 64   ;;  %s660_s30 = smov 4  }
  0x34   :  { %81 = dma.hbm_to_vmem [thread:$0]  %s840_s6, 256, %s76_s29, [#allocation12], %s659_s3, %s659_s3, %s660_s30  }
  0x35   :  { %s661_s19 = smov [#allocation2]   ;;  %s662_s21 = smov [#allocation7]  }
  0x36   :  { %s24_s20 = sshll.u32 %s661_s19, 4  ;;  %s44_s22 = sshll.u32 %s662_s21, 4  ;;  %s25_s20 = int_to_ptr.vmem [resolvable:$true] %s24_s20  ;;  %s45_s22 = int_to_ptr.vmem [resolvable:$true] %s44_s22 }
  0x37   :  { %s536_s25 = scalar_lea.hbm %s834_s0, 128 }
  0x38   :  { %p537_p10 = scmp.ne.s32.totalorder %s834_s0, %s536_s25  ;;  %p540_p11 = scmp.lt.u32.totalorder %s536_s25, %s834_s0 }
  0x3a   :  { %p542_p12 = pnand %p540_p11, %p537_p10 }
  0x3c   :  { %545 = shalt.err (!%p542_p12)
}
  0x3d   :  { %s546_s6 = scalar_lea.vmem %s25_s20, 128  ;;  %p551_p0 = scmp.lt.s32.totalorder %s25_s20, %s25_s20 }
  0x3e   :  { %p547_p13 = scmp.ne.s32.totalorder %s25_s20, %s546_s6  ;;  %p552_p1 = scmp.lt.s32.totalorder %s546_s6, %s546_s6 }
  0x40   :  { %p553_p2 = por %p552_p1, %p551_p0 }
  0x42   :  { %p554_p3 = pnand %p553_p2, %p547_p13 }
  0x44   :  { %557 = shalt.err (!%p554_p3)
}
  0x45   :  { %27 = dma.hbm_to_vmem [thread:$0]  %s834_s0, 128, %s25_s20, [#allocation3]  }
  0x46   :  { %s558_s12 = scalar_lea.hbm %s836_s2, 128 }
  0x47   :  { %p559_p4 = scmp.ne.s32.totalorder %s836_s2, %s558_s12  ;;  %p562_p5 = scmp.lt.u32.totalorder %s558_s12, %s836_s2 }
  0x49   :  { %p564_p6 = pnand %p562_p5, %p559_p4 }
  0x4b   :  { %567 = shalt.err (!%p564_p6)
}
  0x4c   :  { %s568_s3 = scalar_lea.vmem %s45_s22, 128  ;;  %p573_p8 = scmp.lt.s32.totalorder %s45_s22, %s45_s22 }
  0x4d   :  { %p569_p7 = scmp.ne.s32.totalorder %s45_s22, %s568_s3  ;;  %p574_p9 = scmp.lt.s32.totalorder %s568_s3, %s568_s3 }
  0x4f   :  { %p575_p10 = por %p574_p9, %p573_p8 }
  0x51   :  { %p576_p11 = pnand %p575_p10, %p569_p7 }
  0x53   :  { %579 = shalt.err (!%p576_p11)
}
  0x54   :  { %47 = dma.hbm_to_vmem [thread:$0]  %s836_s2, 128, %s45_s22, [#allocation6]  }
  0x55   :  { %s663_s17 = smov [#allocation10]   ;;  %s664_s19 = smov [#allocation13]  }
  0x56   :  { %s64_s18 = sshll.u32 %s663_s17, 4  ;;  %s87_s20 = sshll.u32 %s664_s19, 4  ;;  %s65_s18 = int_to_ptr.vmem [resolvable:$true] %s64_s18  ;;  %s88_s20 = int_to_ptr.vmem [resolvable:$true] %s87_s20 }
  0x57   :  { %s580_s24 = scalar_lea.hbm %s838_s4, 256 }
  0x58   :  { %p581_p12 = scmp.ne.s32.totalorder %s838_s4, %s580_s24  ;;  %p584_p13 = scmp.lt.u32.totalorder %s580_s24, %s838_s4 }
  0x5a   :  { %p586_p0 = pnand %p584_p13, %p581_p12 }
  0x5c   :  { %589 = shalt.err (!%p586_p0)
}
  0x5d   :  { %s590_s2 = scalar_lea.vmem %s65_s18, 256  ;;  %p595_p2 = scmp.lt.s32.totalorder %s65_s18, %s65_s18 }
  0x5e   :  { %p591_p1 = scmp.ne.s32.totalorder %s65_s18, %s590_s2  ;;  %p596_p3 = scmp.lt.s32.totalorder %s590_s2, %s590_s2 }
  0x60   :  { %p597_p4 = por %p596_p3, %p595_p2 }
  0x62   :  { %p598_p5 = pnand %p597_p4, %p591_p1 }
  0x64   :  { %601 = shalt.err (!%p598_p5)
}
  0x65   :  { %67 = dma.hbm_to_vmem [thread:$0]  %s838_s4, 256, %s65_s18, [#allocation9]  }
  0x66   :  { %s602_s9 = scalar_lea.hbm %s841_s7, 2048 }
  0x67   :  { %p603_p6 = scmp.ne.s32.totalorder %s841_s7, %s602_s9  ;;  %p606_p7 = scmp.lt.u32.totalorder %s602_s9, %s841_s7 }
  0x69   :  { %p608_p8 = pnand %p606_p7, %p603_p6 }
  0x6b   :  { %611 = shalt.err (!%p608_p8)
}
  0x6c   :  { %s612_s14 = scalar_lea.vmem %s88_s20, 2048  ;;  %p617_p10 = scmp.lt.s32.totalorder %s88_s20, %s88_s20 }
  0x6d   :  { %p613_p9 = scmp.ne.s32.totalorder %s88_s20, %s612_s14  ;;  %p618_p11 = scmp.lt.s32.totalorder %s612_s14, %s612_s14 }
  0x6f   :  { %p619_p12 = por %p618_p11, %p617_p10 }
  0x71   :  { %p620_p13 = pnand %p619_p12, %p613_p9 }
  0x73   :  { %623 = shalt.err (!%p620_p13)
}
  0x74   :  { %s665_s4 = smov 128   ;;  %s666_s15 = smov 8  }
  0x75   :  { %93 = dma.hbm_to_vmem [thread:$0]  %s841_s7, 2048, %s88_s20, [#allocation12], %s665_s4, %s665_s4, %s666_s15  }
  0x76   :  { %646 = dma.done.wait [#allocation3], 128  }
  0x77   :  { %647 = vsyncadd [#allocation3], 4294967168 }
  0x78   :  { %648 = dma.done.wait [#allocation6], 256  }
  0x79   :  { %649 = vsyncadd [#allocation6], 4294967040 }
  0x7a   :  { %650 = dma.done.wait [#allocation9], 512  }
  0x7b   :  { %651 = vsyncadd [#allocation9], 4294966784 }
  0x7c   :  { %652 = dma.done.wait [#allocation12], 2304  }
  0x7d   :  { %653 = vsyncadd [#allocation12], 4294964992  ;;  %v120_v0 = vlaneseq  ;;  %v667_v1 = vmov 0.0   ;;  %vm668_vm0 = vmmov 0   ;;  %v440_v4 = vld [vmem:[#allocation11] sm:$0xff]   ;;  %v441_v5 = vld [vmem:[#allocation11 + $0x8] sm:$0xff]  }
  0x7e   :  { %417 = vmatprep.subr.bf16.mxu0 %v667_v1  ;;  %421 = vmatprep.mubr.msk.bf16.mxu0 %vm668_vm0, %v667_v1  ;;  %v806_v6 = vld [vmem:[%s839_s5] sm:$0xff]  ;;  %v118_v7 = vld [vmem:[#allocation2] sm:$0xff]  ;;  %v119_v8 = vld [vmem:[#allocation5] sm:$0xff]  ;;  %vm147_vm1 = vcmask 261120   ;;  %v669_v29 = vmov 0  }
  0x7f   :  { %v800_v2 = vshrl.u32 %v120_v0, 7  ;;  %418 = vmatpush3.bf16.msra.mxu0 %v440_v4  ;;  %v442_v10 = vld [vmem:[#allocation13 + $0x4] ss:$8 sps:$4 sm:$0xff]   ;;  %v444_v11 = vld [vmem:[#allocation13] ss:$8 sps:$4 sm:$0xff]   ;;  %336 = vmatprep.mubr.bf16.mxu1 %v669_v29  ;;  %v117_v46 = vld [vmem:[%s839_s5 + $0x8] sm:$0xff] }
  0x80   :  { %419 = vmatprep.subr.bf16.mxu0 %v667_v1  ;;  %304 = vmatprep.subr.bf16.mxu1 %v442_v10  ;;  %v445_v13 = vld [vmem:[#allocation13 + $0x14] ss:$8 sps:$4 sm:$0xff]   ;;  %v447_v14 = vld [vmem:[#allocation13 + $0x10] ss:$8 sps:$4 sm:$0xff]   ;;  %v448_v16 = vld [vmem:[#allocation13 + $0x24] ss:$8 sps:$4 sm:$0xff]  }
  0x81   :  { %v122_v3 = vsub.s32 0, %v800_v2  ;;  %305 = vmatpush1.bf16.msra.mxu1 %v444_v11  ;;  %v450_v18 = vld [vmem:[#allocation13 + $0x20] ss:$8 sps:$4 sm:$0xff]   ;;  %v451_v19 = vld [vmem:[#allocation13 + $0x34] ss:$8 sps:$4 sm:$0xff]   ;;  %v194_v30 = vsub.s32 1, %v800_v2 }
  0x82   :  { %306 = vmatprep.subr.bf16.mxu1 %v445_v13  ;;  %v453_v20 = vld [vmem:[#allocation13 + $0x30] ss:$8 sps:$4 sm:$0xff]   ;;  %v454_v21 = vld [vmem:[#allocation13 + $0x44] ss:$8 sps:$4 sm:$0xff]   ;;  %v456_v22 = vld [vmem:[#allocation13 + $0x40] ss:$8 sps:$4 sm:$0xff]  }
  0x83   :  { %v123_v9 = vrot.slane %v806_v6, %v122_v3  ;;  %420 = vmatpush3.bf16.msra.mxu0 %v441_v5  ;;  %v457_v23 = vld [vmem:[#allocation13 + $0x54] ss:$8 sps:$4 sm:$0xff]   ;;  %v459_v24 = vld [vmem:[#allocation13 + $0x50] ss:$8 sps:$4 sm:$0xff]   ;;  %v460_v25 = vld [vmem:[#allocation13 + $0x64] ss:$8 sps:$4 sm:$0xff]   ;;  %v195_v32 = vrot.slane %v806_v6, %v194_v30 }
  0x84   :  { %v462_v26 = vld [vmem:[#allocation13 + $0x60] ss:$8 sps:$4 sm:$0xff]   ;;  %v463_v27 = vld [vmem:[#allocation13 + $0x74] ss:$8 sps:$4 sm:$0xff]   ;;  %v465_v28 = vld [vmem:[#allocation13 + $0x70] ss:$8 sps:$4 sm:$0xff]  }
  0x85   :  { %v124_v12 = vmul.f32 %v123_v9, %v119_v8  ;;  %307 = vmatpush1.bf16.msra.mxu1 %v447_v14  ;;  %v133_v31 = vsub.s32 4, %v800_v2  ;;  %v191_v33 = vld [vmem:[#allocation7] sm:$0xff]  ;;  %v349_v44 = vsub.s32 2, %v800_v2  ;;  %v218_v45 = vsub.s32 5, %v800_v2  ;;  %v345_v48 = vld [vmem:[#allocation8] sm:$0xff]  ;;  %v346_v51 = vld [vmem:[#allocation8 + $0x8] sm:$0xff] }
  0x86   :  { %308 = vmatprep.subr.bf16.mxu1 %v448_v16  ;;  %v196_v35 = vmul.f32 %v195_v32, %v191_v33  ;;  %v365_v63 = vsub.s32 3, %v800_v2  ;;  %v361_v3 = vld [vmem:[#allocation10] sm:$0xff]  ;;  %v362_v4 = vld [vmem:[#allocation10 + $0x8] sm:$0xff]  ;;  %s670_s5 = smov [#allocation14]  }
  0x87   :  { %v125_v15 = vadd.f32 %v124_v12, %v118_v7  ;;  %v134_v34 = vrot.slane %v806_v6, %v133_v31  ;;  %v350_v47 = vrot.slane %v806_v6, %v349_v44  ;;  %v354_v49 = vrot.slane %v117_v46, %v349_v44  ;;  %s383_s18 = sshll.u32 %s670_s5, 4  ;;  %s384_s18 = int_to_ptr.vmem [resolvable:$true] %s383_s18 }
  0x88   :  { %v219_v50 = vrot.slane %v806_v6, %v218_v45  ;;  %v223_v52 = vrot.slane %v117_v46, %v218_v45  ;;  %v366_v0 = vrot.slane %v806_v6, %v365_v63  ;;  %v370_v1 = vrot.slane %v117_v46, %v365_v63  ;;  %s624_s19 = scalar_lea.vmem %s384_s18, 256  ;;  %p629_p1 = scmp.lt.s32.totalorder %s384_s18, %s384_s18 }
  0x89   :  { %v126_v17 = vpack.c.bf16 %v125_v15, %v125_v15  ;;  %309 = vmatpush1.bf16.msra.mxu1 %v450_v18  ;;  %v355_v53 = vmul.f32 %v350_v47, %v345_v48  ;;  %v356_v55 = vmul.f32 %v354_v49, %v346_v51  ;;  %p625_p0 = scmp.ne.s32.totalorder %s384_s18, %s624_s19  ;;  %p630_p2 = scmp.lt.s32.totalorder %s624_s19, %s624_s19 }
  0x8a   :  { %310 = vmatprep.subr.bf16.mxu1 %v451_v19  ;;  %v371_v5 = vmul.f32 %v366_v0, %v361_v3  ;;  %v372_v7 = vmul.f32 %v370_v1, %v362_v4 }
  0x8b   :  { %422 = vmatmul.mubr.msk.bf16.vlgmr.msra.gmra.mrb[0].mxu0 %vm147_vm1, %v126_v17  ;;  %p631_p3 = por %p630_p2, %p629_p1 }
  0x8d   :  { %311 = vmatpush1.bf16.msra.mxu1 %v453_v20  ;;  %p632_p4 = pnand %p631_p3, %p625_p0 }
  0x8e   :  { %312 = vmatprep.subr.bf16.mxu1 %v454_v21 }
  0x91   :  { %313 = vmatpush1.bf16.msra.mxu1 %v456_v22 }
  0x92   :  { %314 = vmatprep.subr.bf16.mxu1 %v457_v23 }
  0x95   :  { %315 = vmatpush1.bf16.msra.mxu1 %v459_v24 }
  0x96   :  { %316 = vmatprep.subr.bf16.mxu1 %v460_v25 }
  0x99   :  { %317 = vmatpush1.bf16.msra.mxu1 %v462_v26 }
  0x9a   :  { %318 = vmatprep.subr.bf16.mxu1 %v463_v27 }
  0x9d   :  { %319 = vmatpush1.bf16.msra.mxu1 %v465_v28 }
 0x15e   :  { %v185_v36 = vpop.f32.mrb[0].mxu0 }
 0x15f   :  { %v186_v37 = vadd.f32 %v185_v36, %v134_v34  ;;  %v423_v38 = vpop.f32.mrb[1].mxu0 }
 0x160   :  { %v188_v39 = vpop.f32.mrb[2].mxu0 }
 0x161   :  { %v197_v40 = vadd.f32 %v196_v35, %v186_v37  ;;  %v424_v41 = vpop.f32.mrb[3].mxu0 }
 0x163   :  { %v198_v42 = vmax.f32 %v197_v40, 0.0 }
 0x165   :  { %v199_v43 = vpack.c.bf16 %v198_v42, %v198_v42 }
 0x167   :  { %337 = vmatmul.mubr.bf16.vlgmr.msra.gmra.mrb[0].mxu1 %v199_v43 }
 0x23a   :  { %v338_v54 = vpop.f32.mrb[0].mxu1 }
 0x23b   :  { %v339_v56 = vadd.f32 %v338_v54, %v219_v50  ;;  %v340_v57 = vpop.f32.mrb[1].mxu1 }
 0x23c   :  { %v341_v58 = vadd.f32 %v340_v57, %v223_v52  ;;  %v342_v59 = vpop.f32.mrb[2].mxu1 }
 0x23d   :  { %v357_v60 = vadd.f32 %v355_v53, %v339_v56  ;;  %v343_v61 = vpop.f32.mrb[3].mxu1 }
 0x23e   :  { %v358_v62 = vadd.f32 %v356_v55, %v341_v58 }
 0x23f   :  { %466 = vtanh.f32 %v357_v60 }
 0x240   :  { %468 = vtanh.f32 %v358_v62 }
 0x249   :  { %v467_v8 = vpop.eup %466 }
 0x24a   :  { %v469_v9 = vpop.eup %468  ;;  %v373_v10 = vadd.f32 %v467_v8, %v371_v5 }
 0x24b   :  { %v374_v11 = vadd.f32 %v469_v9, %v372_v7 }
 0x24c   :  { %375 = vst [vmem:[#allocation14] sm:$0xff] %v373_v10 }
 0x24d   :  { %376 = vst [vmem:[#allocation14 + $0x8] sm:$0xff] %v374_v11 }
 0x24e   :  { %635 = shalt.err (!%p632_p4)
}
 0x24f   :  { %s636_s23 = scalar_lea.hbm %s842_s8, 256 }
 0x250   :  { %p637_p5 = scmp.ne.s32.totalorder %s842_s8, %s636_s23  ;;  %p640_p6 = scmp.lt.u32.totalorder %s636_s23, %s842_s8 }
 0x252   :  { %p642_p7 = pnand %p640_p6, %p637_p5 }
 0x254   :  { %645 = shalt.err (!%p642_p7)
}
 0x255   :  { %386 = dma.vmem_to_hbm [thread:$0]  %s384_s18, 256, %s842_s8, [#allocation4]  }
 0x256   :  { %654 = dma.done.wait [#allocation4], 256  }
 0x257   :  { %655 = vsyncadd [#allocation4], 4294967040 }
 0x258   :  { %390 = vsyncpa [#allocation3], 1 }
 0x259   :  { %391 = vsyncpa [#allocation6], 1 }
 0x25a   :  { %392 = vsyncpa [#allocation9], 1 }
 0x25b   :  { %393 = vsyncpa [#allocation12], 1 }
 0x25c   :  { %394 = vsyncpa [#allocation4], 1 }

</bundles_post_ra>
